<compile_context>
chip_gen: v6e
topology: v6e:2x2x1
jax: 0.10.0
libtpu: 0.0.40
codegen_flags: <defaults>
</compile_context>

<pallas_src>
import jax
import jax.numpy as jnp
from jax.experimental import pallas as pl
from jax.experimental.pallas import tpu as pltpu

IN_DIM = 32      # dim of trv
HIDDEN = 32      # hidden width of the make_sequence MLP
OUT_DIM = 8      # action dim; per-timestep MLP output size = 2 * OUT_DIM
HORIZON = 4      # number of time-varying modules

LANES = 128      # TPU lane width; all packed slabs use this as the last dim
assert HORIZON * HIDDEN <= LANES
assert 2 * HORIZON * OUT_DIM <= LANES


def _r8(n):
    return ((n + 7) // 8) * 8


# Row layout of the packed parameter slab (all starts 8-aligned).
ROW_W1 = 0                       # rows [0, IN_DIM)           : concat'd layer-1 weights
ROW_B1 = _r8(IN_DIM)             # row 32                     : concat'd layer-1 bias
ROW_W2 = ROW_B1 + 8              # rows [40, 40 + LANES)      : block-diag layer-2 weights
ROW_B2 = ROW_W2 + LANES          # row 168                    : packed layer-2 bias
SLAB_ROWS = _r8(ROW_B2 + 1)      # 176


def _pinet_tv_kernel(slab_ref, trv_ref, noise_ref, out_ref):
    # Unpack the single parameter slab with static, 8-aligned row slices.
    w1 = slab_ref[ROW_W1:ROW_W1 + IN_DIM, :]      # (IN_DIM, 128)  all timesteps, layer 1
    b1 = slab_ref[ROW_B1:ROW_B1 + 1, :]           # (1, 128)
    w2 = slab_ref[ROW_W2:ROW_W2 + LANES, :]       # (128, 128)     block-diagonal layer 2
    b2 = slab_ref[ROW_B2:ROW_B2 + 1, :]           # (1, 128)

    x = trv_ref[...]                              # (1, IN_DIM)

    # Layer 1 for all timesteps at once: hidden units of timestep t live in
    # lanes [t*HIDDEN, (t+1)*HIDDEN).
    h = jnp.tanh(jnp.dot(x, w1, preferred_element_type=jnp.float32) + b1)   # (1, 128)

    # Layer 2: block-diagonal matmul; output columns are
    #   [mean_t0..t3 (32 lanes) | logcov_t0..t3 (32 lanes) | zero pad (64 lanes)].
    o = jnp.dot(h, w2, preferred_element_type=jnp.float32) + b2             # (1, 128)

    n = HORIZON * OUT_DIM
    mean = o[:, :n]                               # (1, 32)
    logcov = o[:, n:2 * n]                        # (1, 32)
    std = jnp.sqrt(jnp.exp(logcov) + 0.001)
    sample = mean + std * noise_ref[...]          # (1, 32)

    # Lane-dense (1, 128) store; wrapper slices the first HORIZON*OUT_DIM lanes.
    out_ref[...] = jnp.concatenate(
        [sample, jnp.zeros((1, LANES - n), jnp.float32)], axis=-1)


def pack_params(params):
    """Coalesce the 4 stacked per-timestep arrays into one lane-dense slab."""
    w1, b1, w2, b2 = params
    hw = HORIZON * HIDDEN

    # Layer 1: concat per-timestep blocks along the output (lane) axis.
    w1_cat = jnp.concatenate([w1[t] for t in range(HORIZON)], axis=1)   # (IN_DIM, hw)
    b1_cat = jnp.concatenate([b1[t] for t in range(HORIZON)], axis=1)   # (1, hw)

    # Layer 2: block diagonal, columns reordered to [all means | all logcovs | pad].
    w2_bd = jnp.zeros((LANES, LANES), jnp.float32)
    b2_cat = jnp.zeros((1, LANES), jnp.float32)
    for t in range(HORIZON):
        r0 = t * HIDDEN
        cm = t * OUT_DIM                           # mean columns for timestep t
        cl = HORIZON * OUT_DIM + t * OUT_DIM       # logcov columns for timestep t
        w2_bd = w2_bd.at[r0:r0 + HIDDEN, cm:cm + OUT_DIM].set(w2[t, :, :OUT_DIM])
        w2_bd = w2_bd.at[r0:r0 + HIDDEN, cl:cl + OUT_DIM].set(w2[t, :, OUT_DIM:])
        b2_cat = b2_cat.at[:, cm:cm + OUT_DIM].set(b2[t, :, :OUT_DIM])
        b2_cat = b2_cat.at[:, cl:cl + OUT_DIM].set(b2[t, :, OUT_DIM:])

    slab = jnp.zeros((SLAB_ROWS, LANES), jnp.float32)
    slab = slab.at[ROW_W1:ROW_W1 + IN_DIM, :hw].set(w1_cat)
    slab = slab.at[ROW_B1:ROW_B1 + 1, :hw].set(b1_cat)
    slab = slab.at[ROW_W2:ROW_W2 + LANES, :].set(w2_bd)
    slab = slab.at[ROW_B2:ROW_B2 + 1, :].set(b2_cat)
    return slab


def pinet_tv_forward_all(slab, trv, noise_all):
    """Samples for ALL timesteps in one pallas_call -> (HORIZON, OUT_DIM)."""
    trv2 = trv.reshape(1, IN_DIM).astype(jnp.float32)
    noise2 = noise_all.reshape(1, HORIZON * OUT_DIM).astype(jnp.float32)
    out = pl.pallas_call(
        _pinet_tv_kernel,
        out_shape=jax.ShapeDtypeStruct((1, LANES), jnp.float32),
        in_specs=[
            pl.BlockSpec(memory_space=pltpu.MemorySpace.VMEM),  # packed param slab
            pl.BlockSpec(memory_space=pltpu.MemorySpace.VMEM),  # trv
            pl.BlockSpec(memory_space=pltpu.MemorySpace.VMEM),  # noise
        ],
        out_specs=pl.BlockSpec(memory_space=pltpu.MemorySpace.VMEM),
    )(slab, trv2, noise2)
    return out[0, :HORIZON * OUT_DIM].reshape(HORIZON, OUT_DIM)


def pinet_tv_forward(slab, trv, t, noise):
    """PiNetTV.forward(trv, t): sample ~ N(mean_t, diag(exp(logcov_t)+1e-3))."""
    noise_all = jnp.broadcast_to(noise.reshape(1, OUT_DIM), (HORIZON, OUT_DIM))
    return pinet_tv_forward_all(slab, trv, noise_all)[t]


def init_params(key):
    """Deterministic parameter init for all HORIZON modules (stacked)."""
    k1, k2, k3, k4 = jax.random.split(key, 4)
    w1 = jax.random.normal(k1, (HORIZON, IN_DIM, HIDDEN), jnp.float32) * 0.1
    b1 = jax.random.normal(k2, (HORIZON, 1, HIDDEN), jnp.float32) * 0.1
    w2 = jax.random.normal(k3, (HORIZON, HIDDEN, 2 * OUT_DIM), jnp.float32) * 0.1
    b2 = jax.random.normal(k4, (HORIZON, 1, 2 * OUT_DIM), jnp.float32) * 0.1
    return w1, b1, w2, b2


def reference_forward(params, trv, t, noise):
    """Pure-JAX reference of the same math (correctness check)."""
    w1, b1, w2, b2 = params
    h = jnp.tanh(trv @ w1[t] + b1[t, 0])
    o = h @ w2[t] + b2[t, 0]
    mean, logcov = o[:OUT_DIM], o[OUT_DIM:]
    std = jnp.sqrt(jnp.exp(logcov) + 0.001)
    return mean + std * noise


if __name__ == "__main__":
    key = jax.random.PRNGKey(0)
    kp, kx, kn = jax.random.split(key, 3)

    params = init_params(kp)
    slab = pack_params(params)
    trv = jax.random.normal(kx, (IN_DIM,), jnp.float32)
    # Standard-normal noise supplied deterministically (stands in for the
    # MultivariateNormal sampler's internal randomness), one row per timestep.
    noise = jax.random.normal(kn, (HORIZON, OUT_DIM), jnp.float32)

    # Amortized call: all HORIZON timesteps in one kernel launch.
    samples = jax.block_until_ready(pinet_tv_forward_all(slab, trv, noise))
    assert samples.shape == (HORIZON, OUT_DIM)
    for t in range(HORIZON):
        ref_t = reference_forward(params, trv, t, noise[t])
        assert jnp.allclose(samples[t], ref_t, atol=1e-5, rtol=1e-4), (t, samples[t], ref_t)

    # Single (trv, t) forward — matches PiNetTV.forward semantics.
    t = 2
    out = jax.block_until_ready(pinet_tv_forward(slab, trv, t, noise[t]))
    ref = reference_forward(params, trv, t, noise[t])
    assert out.shape == (OUT_DIM,)
    assert jnp.allclose(out, ref, atol=1e-5, rtol=1e-4), (out, ref)

    print("KERNEL_OK")
</pallas_src>

<mosaic_0001>
module attributes {stable_mosaic.version = 11 : i64} {
  func.func @_pinet_tv_kernel(%arg0: memref<176x128xf32, #tpu.memory_space<vmem>>, %arg1: memref<1x32xf32, #tpu.memory_space<vmem>>, %arg2: memref<1x32xf32, #tpu.memory_space<vmem>>, %arg3: memref<1x128xf32, #tpu.memory_space<vmem>>) attributes {dimension_semantics = [], scalar_prefetch = 0 : i64, scratch_operands = 0 : i64, tpu.core_type = #tpu.core_type<tc>} {
    %c0 = arith.constant 0 : index
    %c0_0 = arith.constant 0 : index
    %0 = vector.load %arg0[%c0, %c0_0] : memref<176x128xf32, #tpu.memory_space<vmem>>, vector<32x128xf32>
    %c32 = arith.constant 32 : index
    %c0_1 = arith.constant 0 : index
    %1 = vector.load %arg0[%c32, %c0_1] : memref<176x128xf32, #tpu.memory_space<vmem>>, vector<1x128xf32>
    %c40 = arith.constant 40 : index
    %c0_2 = arith.constant 0 : index
    %2 = vector.load %arg0[%c40, %c0_2] : memref<176x128xf32, #tpu.memory_space<vmem>>, vector<128x128xf32>
    %c168 = arith.constant 168 : index
    %c0_3 = arith.constant 0 : index
    %3 = vector.load %arg0[%c168, %c0_3] : memref<176x128xf32, #tpu.memory_space<vmem>>, vector<1x128xf32>
    %c0_4 = arith.constant 0 : index
    %c0_5 = arith.constant 0 : index
    %4 = vector.load %arg1[%c0_4, %c0_5] : memref<1x32xf32, #tpu.memory_space<vmem>>, vector<1x32xf32>
    %cst = arith.constant dense<0.000000e+00> : vector<1x128xf32>
    %5 = tpu.matmul %4, %0, %cst {dimension_numbers = #tpu.dot_dimension_numbers<[1], [0], [0], [1], [0, 0, 1, 1], [], []>} : vector<1x32xf32>, vector<32x128xf32>, vector<1x128xf32> -> vector<1x128xf32>
    %6 = arith.addf %5, %1 : vector<1x128xf32>
    %7 = math.tanh %6 : vector<1x128xf32>
    %cst_6 = arith.constant dense<0.000000e+00> : vector<1x128xf32>
    %8 = tpu.matmul %7, %2, %cst_6 {dimension_numbers = #tpu.dot_dimension_numbers<[1], [0], [0], [1], [0, 0, 1, 1], [], []>} : vector<1x128xf32>, vector<128x128xf32>, vector<1x128xf32> -> vector<1x128xf32>
    %9 = arith.addf %8, %3 : vector<1x128xf32>
    %10 = vector.extract_strided_slice %9 {offsets = [0, 0], sizes = [1, 32], strides = [1, 1]} : vector<1x128xf32> to vector<1x32xf32>
    %11 = vector.extract_strided_slice %9 {offsets = [0, 32], sizes = [1, 32], strides = [1, 1]} : vector<1x128xf32> to vector<1x32xf32>
    %12 = math.exp %11 : vector<1x32xf32>
    %cst_7 = arith.constant 1.000000e-03 : f32
    %13 = vector.broadcast %cst_7 : f32 to vector<1x32xf32>
    %14 = arith.addf %12, %13 : vector<1x32xf32>
    %15 = math.sqrt %14 : vector<1x32xf32>
    %c0_8 = arith.constant 0 : index
    %c0_9 = arith.constant 0 : index
    %16 = vector.load %arg2[%c0_8, %c0_9] : memref<1x32xf32, #tpu.memory_space<vmem>>, vector<1x32xf32>
    %17 = arith.mulf %15, %16 : vector<1x32xf32>
    %18 = arith.addf %10, %17 : vector<1x32xf32>
    %cst_10 = arith.constant 0.000000e+00 : f32
    %19 = vector.broadcast %cst_10 : f32 to vector<1x96xf32>
    %20 = tpu.concatenate %18, %19 in 1 : vector<1x32xf32>, vector<1x96xf32> -> vector<1x128xf32>
    %c0_11 = arith.constant 0 : index
    %c0_12 = arith.constant 0 : index
    %21 = vector.load %arg3[%c0_11, %c0_12] : memref<1x128xf32, #tpu.memory_space<vmem>>, vector<1x128xf32>
    tpu.vector_store %arg3[%c0_11, %c0_12], %20 {strides = array<i32>} : memref<1x128xf32, #tpu.memory_space<vmem>>, vector<1x128xf32>,
    return
  }
}

</mosaic_0001>

<bundles_post_ra>
// kernel: tpu_custom_call.1
= control target key start
LH: loop header
LB: loop body
LE: loop exit
PB: predicated region body
PF: predicated region fallthrough
CT: control target
= control target key end

     0   :  { %8 = vsyncpa [#allocation3], 0  ;;  %s431_s0 = inlined_call_operand.hbm [shape: f32[176,128], index: 0, kind: input, shape index: {}]   ;;  %s432_s1 = inlined_call_operand.vmem [shape: f32[1,32], index: 1, kind: input, shape index: {}]   ;;  %s433_s2 = inlined_call_operand.vmem [shape: f32[1,32], index: 2, kind: input, shape index: {}]   ;;  %s434_s3 = inlined_call_operand.hbm [shape: f32[1,128], index: 3, kind: output, shape index: {}]  }
   0x1   :  { %9 = vsyncpa [#allocation4], 0  ;;  %s367_s12 = smov [#allocation2]  }
   0x2   :  { %s15_s13 = sshll.u32 %s367_s12, 4  ;;  %s16_s13 = int_to_ptr.vmem [resolvable:$true] %s15_s13 }
   0x3   :  { %s331_s14 = scalar_lea.vmem %s16_s13, 2816  ;;  %p336_p1 = scmp.lt.s32.totalorder %s16_s13, %s16_s13 }
   0x4   :  { %p332_p0 = scmp.ne.s32.totalorder %s16_s13, %s331_s14  ;;  %p337_p2 = scmp.lt.s32.totalorder %s331_s14, %s331_s14 }
   0x6   :  { %p338_p3 = por %p337_p2, %p336_p1 }
   0x8   :  { %p339_p4 = pnand %p338_p3, %p332_p0 }
   0xa   :  { %342 = shalt.err (!%p339_p4)
}
   0xb   :  { %s368_s15 = smov 128   ;;  %s369_s16 = smov 8  }
   0xc   :  { %21 = dma.hbm_to_vmem [thread:$0]  %s431_s0, 2816, %s16_s13, [#allocation3], %s368_s15, %s368_s15, %s369_s16  }
   0xd   :  { %363 = dma.done.wait [#allocation3], 2816  }
   0xe   :  { %364 = vsyncadd [#allocation3], 4294964480  ;;  %v370_v0 = vmov 0.0   ;;  %vm371_vm0 = vmmov 0   ;;  %v32_v1 = vld [vmem:[#allocation2 + $0x18] sm:$0xff]  ;;  %v31_v2 = vld [vmem:[#allocation2 + $0x10] sm:$0xff] }
   0xf   :  { %263 = vmatprep.subr.mxu0 %v370_v0  ;;  %271 = vmatprep.mubr.msk.f32.mxu0 %vm371_vm0, %v370_v0  ;;  %v49_v3 = vld [vmem:[#allocation2 + $0xa0] sm:$0xff]  ;;  %v30_v4 = vld [vmem:[#allocation2 + $0x8] sm:$0xff]  ;;  %v48_v5 = vld [vmem:[#allocation2 + $0x98] sm:$0xff]  ;;  %vm52_vm1 = vcmask 261120   ;;  %s372_s21 = smov 32   ;;  %s374_s22 = smov [#allocation5]  }
  0x10   :  { %274 = vmatprep.subr.mxu1 %v370_v0  ;;  %306 = vmatprep.mubr.msk.f32.mxu1 %vm371_vm0, %v370_v0  ;;  %v47_v6 = vld [vmem:[#allocation2 + $0x90] sm:$0xff]  ;;  %v29_v7 = vld [vmem:[#allocation2] sm:$0xff]  ;;  %v46_v9 = vld [vmem:[#allocation2 + $0x88] sm:$0xff]  ;;  %s230_s23 = sshll.u32 %s374_s22, 4  ;;  %s231_s23 = int_to_ptr.vmem [resolvable:$true] %s230_s23 }
  0x11   :  { %264 = vmatpush3.msra.mxu0 %v32_v1  ;;  %275 = vmatpush3.msra.mxu1 %v49_v3  ;;  %v51_v8 = vld [vmem:[%s432_s1] sm:$0x1]  ;;  %v44_v11 = vld [vmem:[#allocation2 + $0x78] sm:$0xff]  ;;  %v43_v12 = vld [vmem:[#allocation2 + $0x70] sm:$0xff]  ;;  %s343_s24 = scalar_lea.vmem %s231_s23, 16  ;;  %s347_s25 = scalar_lea.vmem %s231_s23, 32 }
  0x12   :  { %265 = vmatprep.subr.mxu0 %v370_v0  ;;  %276 = vmatprep.subr.mxu1 %v370_v0  ;;  %v45_v10 = vld [vmem:[#allocation2 + $0x80] sm:$0xff]  ;;  %v42_v13 = vld [vmem:[#allocation2 + $0x68] sm:$0xff]  ;;  %v40_v15 = vld [vmem:[#allocation2 + $0x58] sm:$0xff]  ;;  %p344_p5 = scmp.ne.s32.totalorder %s231_s23, %s343_s24  ;;  %p348_p6 = scmp.lt.s32.totalorder %s231_s23, %s231_s23 }
  0x13   :  { %266 = vmatpush3.msra.mxu0 %v31_v2  ;;  %277 = vmatpush3.msra.mxu1 %v48_v5  ;;  %v41_v14 = vld [vmem:[#allocation2 + $0x60] sm:$0xff]  ;;  %v39_v16 = vld [vmem:[#allocation2 + $0x50] sm:$0xff]  ;;  %v38_v17 = vld [vmem:[#allocation2 + $0x48] sm:$0xff]  ;;  %p349_p7 = scmp.lt.s32.totalorder %s347_s25, %s343_s24 }
  0x14   :  { %267 = vmatprep.subr.mxu0 %v370_v0  ;;  %278 = vmatprep.subr.mxu1 %v370_v0  ;;  %v37_v18 = vld [vmem:[#allocation2 + $0x40] sm:$0xff]  ;;  %v36_v19 = vld [vmem:[#allocation2 + $0x38] sm:$0xff]  ;;  %v35_v20 = vld [vmem:[#allocation2 + $0x30] sm:$0xff] }
  0x15   :  { %268 = vmatpush3.msra.mxu0 %v30_v4  ;;  %279 = vmatpush3.msra.mxu1 %v47_v6  ;;  %v34_v21 = vld [vmem:[#allocation2 + $0x28] sm:$0xff]  ;;  %v240_v22 = vld [vmem:[%s433_s2] ss:$0 sm:$0xff]  ;;  %s373_s2 = smov 96   ;;  %p350_p8 = por %p349_p7, %p348_p6 }
  0x16   :  { %269 = vmatprep.subr.mxu0 %v370_v0  ;;  %280 = vmatprep.subr.mxu1 %v370_v0  ;;  %v33_v23 = vld [vmem:[#allocation2 + $0x20] sm:$0x1]  ;;  %v50_v28 = vld [vmem:[#allocation2 + $0xa8] sm:$0x1] }
  0x17   :  { %270 = vmatpush3.msra.mxu0 %v29_v7  ;;  %281 = vmatpush3.msra.mxu1 %v46_v9  ;;  %p351_p9 = pnand %p350_p8, %p344_p5 }
  0x18   :  { %272 = vmatmul.mubr.msk.f32.vlgmr.msra.gmra.mxu0 %vm52_vm1, %v51_v8  ;;  %282 = vmatprep.subr.mxu1 %v370_v0 }
  0x19   :  { %283 = vmatpush3.msra.mxu1 %v45_v10  ;;  %213 = vrot.lane.b32.xlu0 %v240_v22, %s372_s21 }
  0x1a   :  { %284 = vmatprep.subr.mxu1 %v370_v0 }
  0x1b   :  { %285 = vmatpush3.msra.mxu1 %v44_v11 }
  0x1c   :  { %286 = vmatprep.subr.mxu1 %v370_v0 }
  0x1d   :  { %287 = vmatpush3.msra.mxu1 %v43_v12 }
  0x1e   :  { %288 = vmatprep.subr.mxu1 %v370_v0 }
  0x1f   :  { %289 = vmatpush3.msra.mxu1 %v42_v13 }
  0x20   :  { %290 = vmatprep.subr.mxu1 %v370_v0 }
  0x21   :  { %291 = vmatpush3.msra.mxu1 %v41_v14 }
  0x22   :  { %292 = vmatprep.subr.mxu1 %v370_v0 }
  0x23   :  { %293 = vmatpush3.msra.mxu1 %v40_v15 }
  0x24   :  { %294 = vmatprep.subr.mxu1 %v370_v0 }
  0x25   :  { %295 = vmatpush3.msra.mxu1 %v39_v16 }
  0x26   :  { %296 = vmatprep.subr.mxu1 %v370_v0 }
  0x27   :  { %297 = vmatpush3.msra.mxu1 %v38_v17 }
  0x28   :  { %298 = vmatprep.subr.mxu1 %v370_v0 }
  0x29   :  { %299 = vmatpush3.msra.mxu1 %v37_v18 }
  0x2a   :  { %300 = vmatprep.subr.mxu1 %v370_v0 }
  0x2b   :  { %301 = vmatpush3.msra.mxu1 %v36_v19 }
  0x2c   :  { %302 = vmatprep.subr.mxu1 %v370_v0 }
  0x2d   :  { %303 = vmatpush3.msra.mxu1 %v35_v20 }
  0x2e   :  { %304 = vmatprep.subr.mxu1 %v370_v0 }
  0x2f   :  { %305 = vmatpush3.msra.mxu1 %v34_v21 }
  0x8b   :  { %v214_v37 = vpop.permute.xlu0 %213 }
  0xd8   :  { %v122_v24 = vpop.f32.mrf.mxu0 }
  0xd9   :  { %v123_v25 = vadd.f32 %v122_v24, %v33_v23 }
  0xda   :  { %v273_v26 = vpop.f32.mrf.mxu0 }
  0xdb   :  { %317 = vtanh.f32 %v123_v25 }
  0xe8   :  { %v318_v27 = vpop.eup %317 }
  0xe9   :  { %307 = vmatmul.mubr.f32.vlgmr.msra.gmra.mxu1 %v318_v27 }
 0x1a9   :  { %v193_v29 = vpop.f32.mrf.mxu1 }
 0x1aa   :  { %v194_v30 = vadd.f32 %v193_v29, %v50_v28 }
 0x1ab   :  { %v308_v31 = vpop.f32.mrf.mxu1 }
 0x1ac   :  { %v197_v32 = vmul.f32 1.442695, %v194_v30 }
 0x1ae   :  { %319 = vpow2.f32 %v197_v32 }
 0x1bb   :  { %v320_v33 = vpop.eup %319 }
 0x1bc   :  { %v199_v34 = vadd.f32 0.001, %v320_v33 }
 0x1be   :  { %321 = vrsqrt.f32 %v199_v34  ;;  %vm202_vm2 = vcmp.eq.f32.partialorder %v199_v34, inf  ;;  %v205_v38 = vand.u32 2147483648, %v199_v34  ;;  %vm204_vm3 = vcmp.eq.f32.partialorder %v199_v34, 0.0 }
 0x1cb   :  { %v322_v35 = vpop.eup %321 }
 0x1cc   :  { %v201_v36 = vmul.f32 %v322_v35, %v199_v34 }
 0x1ce   :  { %v203_v39 = vsel %vm202_vm2, %v199_v34, %v201_v36 }
 0x1cf   :  { %v206_v40 = vsel %vm204_vm3, %v205_v38, %v203_v39 }
 0x1d0   :  { %v216_v41 = vmul.f32 %v214_v37, %v206_v40 }
 0x1d2   :  { %218 = vrot.lane.b32.xlu0 %v216_v41, %s373_s2 }
 0x244   :  { %v219_v42 = vpop.permute.xlu0 %218 }
 0x245   :  { %v221_v43 = vadd.f32 %v219_v42, %v194_v30 }
 0x247   :  { %v222_v44 = vsel %vm52_vm1, %v221_v43, 0.0 }
 0x248   :  { %223 = vst [vmem:[#allocation5] sm:$0x1] %v222_v44 }
 0x249   :  { %354 = shalt.err (!%p351_p9)
}
 0x24a   :  { %233 = dma.vmem_to_hbm [thread:$0]  %s231_s23, 16, %s434_s3, [#allocation4]  }
 0x24b   :  { %365 = dma.done.wait [#allocation4], 16  }
 0x24c   :  { %366 = vsyncadd [#allocation4], 4294967280 }
 0x24d   :  { %237 = vsyncpa [#allocation3], 1 }
 0x24e   :  { %238 = vsyncpa [#allocation4], 1 }

</bundles_post_ra>
